<compile_context>
chip_gen: v5e
topology: v5e:2x2
jax: 0.10.0
libtpu: 0.0.40
codegen_flags: <defaults>
</compile_context>

<pallas_src>
import functools

import jax
import jax.numpy as jnp
from jax.experimental import pallas as pl
from jax.experimental.pallas import tpu as pltpu

N_GROUPS = 3 * 3      # 9 groups of 3 features -> input_dim = 27
GROUP_DIM = 3
H1 = 16
H2 = 9
G1 = 16
IN_DIM = N_GROUPS * GROUP_DIM            # 27
BD1 = N_GROUPS * H1                      # 144
BD2 = N_GROUPS * H2                      # 81
LANE = 128                               # batch tile granularity (lane width)


def _round_up(n, m):
    return ((n + m - 1) // m) * m


def symnn_kernel(x_ref, w1_ref, b1_ref, w2_ref, b2_ref,
                 wg1_ref, bg1_ref, wg2_ref, bg2_ref, out_ref, *, act_bf16):
    # Batch-on-lanes layout: every intermediate is (features, TB), so tanh /
    # bias-add operate on lane-dense vregs and the output store is lane-dense.
    def act(y):
        if act_bf16:
            # Opt-in (v6e/v7x): bf16 tanh halves EUP pushes; breaks 1e-5 parity.
            return jnp.tanh(y.astype(jnp.bfloat16)).astype(jnp.float32)
        return jnp.tanh(y)

    def dot(a, b):
        # Default MXU f32 precision already matches the f32 reference to
        # ~1e-7 at these magnitudes; pass precision=jax.lax.Precision.HIGHEST
        # here if strict bit-level parity with a PyTorch f32 forward is needed.
        return jnp.dot(a, b, preferred_element_type=jnp.float32)

    xT = x_ref[...]                                            # (27,  TB)
    h1 = act(dot(w1_ref[...], xT) + b1_ref[...])               # (144, TB)
    h2 = act(dot(w2_ref[...], h1) + b2_ref[...])               # (81,  TB)
    # Group-sum is folded into wg1 (tiled x9 along K: 9 -> 81).
    z1 = act(dot(wg1_ref[...], h2) + bg1_ref[...])             # (16,  TB)
    z2 = dot(wg2_ref[...], z1) + bg2_ref[...]                  # (A,   TB)
    out_ref[...] = z2.astype(out_ref.dtype)


def pack_params(p):
    """Restructure PyTorch-layout weights into the kernel's transposed,
    block-diagonal layout (done once)."""
    eye9 = jnp.eye(N_GROUPS, dtype=jnp.float32)
    w1_bd = jnp.kron(eye9, p["w1"])                    # (27, 144) block-diagonal
    w2_bd = jnp.kron(eye9, p["w2"])                    # (144, 81) block-diagonal
    wg1_r = jnp.tile(p["wg1"], (N_GROUPS, 1))          # (81, 16)  folds group-sum
    return {
        "w1t":  w1_bd.T,                               # (144, 27)
        "b1t":  jnp.tile(p["b1"], (1, N_GROUPS)).T,    # (144, 1)
        "w2t":  w2_bd.T,                               # (81, 144)
        "b2t":  jnp.tile(p["b2"], (1, N_GROUPS)).T,    # (81, 1)
        "wg1t": wg1_r.T,                               # (16, 81)
        "bg1t": p["bg1"].T,                            # (16, 1)
        "wg2t": p["wg2"].T,                            # (A, 16)
        "bg2t": p["bg2"].T,                            # (A, 1)
    }


def symnn_forward(x, packed, *, block_b=4096, act_bf16=False):
    """x: (B, 27) float32. packed: output of pack_params. Returns (B, action_dim)."""
    B, in_dim = x.shape
    assert in_dim == IN_DIM
    action_dim = packed["wg2t"].shape[0]

    # Tile selection:
    #  * batch lives on the lane axis -> tiles are multiples of 128,
    #  * n_tiles = cdiv(B, block_b), forced >= 2 when there is enough work so
    #    the "parallel" axis shards across v7x's two TensorCores,
    #  * tb = round_up(cdiv(B, n_tiles), 128) keeps padding <= 127 rows/tile.
    n_tiles = pl.cdiv(B, block_b)
    if n_tiles < 2 and B > LANE:
        n_tiles = 2
    tb = _round_up(pl.cdiv(B, n_tiles), LANE)
    b_pad = n_tiles * tb

    xT = x.T                                            # (27, B): batch on lanes
    if b_pad != B:
        xT = jnp.pad(xT, ((0, 0), (0, b_pad - B)))

    def const_spec(a):   # weights/biases: same block every grid step -> resident
        return pl.BlockSpec(a.shape, lambda i: (0, 0))

    weights = (packed["w1t"], packed["b1t"], packed["w2t"], packed["b2t"],
               packed["wg1t"], packed["bg1t"], packed["wg2t"], packed["bg2t"])

    out_t = pl.pallas_call(
        functools.partial(symnn_kernel, act_bf16=act_bf16),
        out_shape=jax.ShapeDtypeStruct((action_dim, b_pad), jnp.float32),
        grid=(n_tiles,),
        in_specs=[pl.BlockSpec((IN_DIM, tb), lambda i: (0, i))]
                 + [const_spec(w) for w in weights],
        out_specs=pl.BlockSpec((action_dim, tb), lambda i: (0, i)),
        compiler_params=pltpu.CompilerParams(
            dimension_semantics=("parallel",),
            # ~6 MiB working set at tb=4096 in this layout; 32 MiB gives
            # generous headroom on every generation (raises v5e's 16 MiB
            # default, matches v6e/v7x defaults, < v7x's 64 MiB physical).
            vmem_limit_bytes=32 * 1024 * 1024),
    )(xT, *weights)
    return out_t[:, :B].T


def make_params(key, action_dim):
    ks = jax.random.split(key, 8)
    scale = 0.1
    return {
        "w1":  scale * jax.random.normal(ks[0], (GROUP_DIM, H1), jnp.float32),
        "b1":  scale * jax.random.normal(ks[1], (1, H1), jnp.float32),
        "w2":  scale * jax.random.normal(ks[2], (H1, H2), jnp.float32),
        "b2":  scale * jax.random.normal(ks[3], (1, H2), jnp.float32),
        "wg1": scale * jax.random.normal(ks[4], (H2, G1), jnp.float32),
        "bg1": scale * jax.random.normal(ks[5], (1, G1), jnp.float32),
        "wg2": scale * jax.random.normal(ks[6], (G1, action_dim), jnp.float32),
        "bg2": scale * jax.random.normal(ks[7], (1, action_dim), jnp.float32),
    }


def symnn_reference(x, p):
    """Pure-JAX reference mirroring the PyTorch forward exactly."""
    zs = []
    for i in range(N_GROUPS):
        xi = x[:, GROUP_DIM * i: GROUP_DIM * (i + 1)]
        y = jnp.tanh(xi @ p["w1"] + p["b1"])
        zs.append(jnp.tanh(y @ p["w2"] + p["b2"]))
    z = jnp.sum(jnp.stack(zs, axis=1), axis=1)
    z1 = jnp.tanh(z @ p["wg1"] + p["bg1"])
    return z1 @ p["wg2"] + p["bg2"]


if __name__ == "__main__":
    key = jax.random.PRNGKey(0)
    k_x1, k_x2, k_x3, k_p = jax.random.split(key, 4)

    action_dim = 4
    params = make_params(k_p, action_dim)
    packed = pack_params(params)

    # B=8: single-tile path; B=70: non-multiple-of-128 padding path;
    # B=300: multi-tile (2-TensorCore) path with the padding/tile-count fix.
    for B, kx in ((8, k_x1), (70, k_x2), (300, k_x3)):
        x = jax.random.normal(kx, (B, IN_DIM), jnp.float32)
        out = jax.block_until_ready(symnn_forward(x, packed))
        ref = symnn_reference(x, params)
        assert out.shape == (B, action_dim)
        assert jnp.allclose(out, ref, atol=1e-5, rtol=1e-5), "mismatch vs reference"

    print("KERNEL_OK")
</pallas_src>

<mosaic_0001>
module attributes {stable_mosaic.version = 11 : i64} {
  func.func @symnn_kernel(%arg0: i32, %arg1: memref<27x128xf32, #tpu.memory_space<vmem>>, %arg2: memref<144x27xf32, #tpu.memory_space<vmem>>, %arg3: memref<144x1xf32, #tpu.memory_space<vmem>>, %arg4: memref<81x144xf32, #tpu.memory_space<vmem>>, %arg5: memref<81x1xf32, #tpu.memory_space<vmem>>, %arg6: memref<16x81xf32, #tpu.memory_space<vmem>>, %arg7: memref<16x1xf32, #tpu.memory_space<vmem>>, %arg8: memref<4x16xf32, #tpu.memory_space<vmem>>, %arg9: memref<4x1xf32, #tpu.memory_space<vmem>>, %arg10: memref<4x128xf32, #tpu.memory_space<vmem>>) attributes {dimension_semantics = [#tpu.dimension_semantics<parallel>], iteration_bounds = array<i64: 1>, scalar_prefetch = 0 : i64, scratch_operands = 0 : i64, tpu.core_type = #tpu.core_type<tc>, window_params = [{transform_indices = @transform_0, window_bounds = array<i64: 27, 128>}, {pipeline_mode = #tpu.pipeline_mode<synchronous>, transform_indices = @transform_1, window_bounds = array<i64: 144, 27>}, {pipeline_mode = #tpu.pipeline_mode<synchronous>, transform_indices = @transform_2, window_bounds = array<i64: 144, 1>}, {pipeline_mode = #tpu.pipeline_mode<synchronous>, transform_indices = @transform_3, window_bounds = array<i64: 81, 144>}, {pipeline_mode = #tpu.pipeline_mode<synchronous>, transform_indices = @transform_4, window_bounds = array<i64: 81, 1>}, {pipeline_mode = #tpu.pipeline_mode<synchronous>, transform_indices = @transform_5, window_bounds = array<i64: 16, 81>}, {pipeline_mode = #tpu.pipeline_mode<synchronous>, transform_indices = @transform_6, window_bounds = array<i64: 16, 1>}, {pipeline_mode = #tpu.pipeline_mode<synchronous>, transform_indices = @transform_7, window_bounds = array<i64: 4, 16>}, {pipeline_mode = #tpu.pipeline_mode<synchronous>, transform_indices = @transform_8, window_bounds = array<i64: 4, 1>}, {transform_indices = @transform_9, window_bounds = array<i64: 4, 128>}]} {
    %c0 = arith.constant 0 : index
    %c0_0 = arith.constant 0 : index
    %0 = vector.load %arg1[%c0, %c0_0] : memref<27x128xf32, #tpu.memory_space<vmem>>, vector<27x128xf32>
    %c0_1 = arith.constant 0 : index
    %c0_2 = arith.constant 0 : index
    %1 = vector.load %arg2[%c0_1, %c0_2] : memref<144x27xf32, #tpu.memory_space<vmem>>, vector<144x27xf32>
    %cst = arith.constant dense<0.000000e+00> : vector<144x128xf32>
    %2 = tpu.matmul %1, %0, %cst {dimension_numbers = #tpu.dot_dimension_numbers<[1], [0], [0], [1], [0, 0, 1, 1], [], []>} : vector<144x27xf32>, vector<27x128xf32>, vector<144x128xf32> -> vector<144x128xf32>
    %c0_3 = arith.constant 0 : index
    %c0_4 = arith.constant 0 : index
    %3 = vector.load %arg3[%c0_3, %c0_4] : memref<144x1xf32, #tpu.memory_space<vmem>>, vector<144x1xf32>
    %4 = vector.broadcast %3 : vector<144x1xf32> to vector<144x128xf32>
    %5 = arith.addf %2, %4 : vector<144x128xf32>
    %6 = math.tanh %5 : vector<144x128xf32>
    %c0_5 = arith.constant 0 : index
    %c0_6 = arith.constant 0 : index
    %7 = vector.load %arg4[%c0_5, %c0_6] : memref<81x144xf32, #tpu.memory_space<vmem>>, vector<81x144xf32>
    %cst_7 = arith.constant dense<0.000000e+00> : vector<81x128xf32>
    %8 = tpu.matmul %7, %6, %cst_7 {dimension_numbers = #tpu.dot_dimension_numbers<[1], [0], [0], [1], [0, 0, 1, 1], [], []>} : vector<81x144xf32>, vector<144x128xf32>, vector<81x128xf32> -> vector<81x128xf32>
    %c0_8 = arith.constant 0 : index
    %c0_9 = arith.constant 0 : index
    %9 = vector.load %arg5[%c0_8, %c0_9] : memref<81x1xf32, #tpu.memory_space<vmem>>, vector<81x1xf32>
    %10 = vector.broadcast %9 : vector<81x1xf32> to vector<81x128xf32>
    %11 = arith.addf %8, %10 : vector<81x128xf32>
    %12 = math.tanh %11 : vector<81x128xf32>
    %c0_10 = arith.constant 0 : index
    %c0_11 = arith.constant 0 : index
    %13 = vector.load %arg6[%c0_10, %c0_11] : memref<16x81xf32, #tpu.memory_space<vmem>>, vector<16x81xf32>
    %cst_12 = arith.constant dense<0.000000e+00> : vector<16x128xf32>
    %14 = tpu.matmul %13, %12, %cst_12 {dimension_numbers = #tpu.dot_dimension_numbers<[1], [0], [0], [1], [0, 0, 1, 1], [], []>} : vector<16x81xf32>, vector<81x128xf32>, vector<16x128xf32> -> vector<16x128xf32>
    %c0_13 = arith.constant 0 : index
    %c0_14 = arith.constant 0 : index
    %15 = vector.load %arg7[%c0_13, %c0_14] : memref<16x1xf32, #tpu.memory_space<vmem>>, vector<16x1xf32>
    %16 = vector.broadcast %15 : vector<16x1xf32> to vector<16x128xf32>
    %17 = arith.addf %14, %16 : vector<16x128xf32>
    %18 = math.tanh %17 : vector<16x128xf32>
    %c0_15 = arith.constant 0 : index
    %c0_16 = arith.constant 0 : index
    %19 = vector.load %arg8[%c0_15, %c0_16] : memref<4x16xf32, #tpu.memory_space<vmem>>, vector<4x16xf32>
    %cst_17 = arith.constant dense<0.000000e+00> : vector<4x128xf32>
    %20 = tpu.matmul %19, %18, %cst_17 {dimension_numbers = #tpu.dot_dimension_numbers<[1], [0], [0], [1], [0, 0, 1, 1], [], []>} : vector<4x16xf32>, vector<16x128xf32>, vector<4x128xf32> -> vector<4x128xf32>
    %c0_18 = arith.constant 0 : index
    %c0_19 = arith.constant 0 : index
    %21 = vector.load %arg9[%c0_18, %c0_19] : memref<4x1xf32, #tpu.memory_space<vmem>>, vector<4x1xf32>
    %22 = vector.broadcast %21 : vector<4x1xf32> to vector<4x128xf32>
    %23 = arith.addf %20, %22 : vector<4x128xf32>
    %c0_20 = arith.constant 0 : index
    %c0_21 = arith.constant 0 : index
    %24 = vector.load %arg10[%c0_20, %c0_21] : memref<4x128xf32, #tpu.memory_space<vmem>>, vector<4x128xf32>
    tpu.vector_store %arg10[%c0_20, %c0_21], %23 {strides = array<i32>} : memref<4x128xf32, #tpu.memory_space<vmem>>, vector<4x128xf32>,
    return
  }
  func.func @transform_0(%arg0: i32) -> (i32, i32) {
    %c0_i32 = arith.constant 0 : i32
    %c0_i32_0 = arith.constant 0 : i32
    return %c0_i32, %arg0 : i32, i32
  }
  func.func @transform_1(%arg0: i32) -> (i32, i32) {
    %c0_i32 = arith.constant 0 : i32
    %c0_i32_0 = arith.constant 0 : i32
    %c0_i32_1 = arith.constant 0 : i32
    return %c0_i32, %c0_i32_0 : i32, i32
  }
  func.func @transform_2(%arg0: i32) -> (i32, i32) {
    %c0_i32 = arith.constant 0 : i32
    %c0_i32_0 = arith.constant 0 : i32
    %c0_i32_1 = arith.constant 0 : i32
    return %c0_i32, %c0_i32_0 : i32, i32
  }
  func.func @transform_3(%arg0: i32) -> (i32, i32) {
    %c0_i32 = arith.constant 0 : i32
    %c0_i32_0 = arith.constant 0 : i32
    %c0_i32_1 = arith.constant 0 : i32
    return %c0_i32, %c0_i32_0 : i32, i32
  }
  func.func @transform_4(%arg0: i32) -> (i32, i32) {
    %c0_i32 = arith.constant 0 : i32
    %c0_i32_0 = arith.constant 0 : i32
    %c0_i32_1 = arith.constant 0 : i32
    return %c0_i32, %c0_i32_0 : i32, i32
  }
  func.func @transform_5(%arg0: i32) -> (i32, i32) {
    %c0_i32 = arith.constant 0 : i32
    %c0_i32_0 = arith.constant 0 : i32
    %c0_i32_1 = arith.constant 0 : i32
    return %c0_i32, %c0_i32_0 : i32, i32
  }
  func.func @transform_6(%arg0: i32) -> (i32, i32) {
    %c0_i32 = arith.constant 0 : i32
    %c0_i32_0 = arith.constant 0 : i32
    %c0_i32_1 = arith.constant 0 : i32
    return %c0_i32, %c0_i32_0 : i32, i32
  }
  func.func @transform_7(%arg0: i32) -> (i32, i32) {
    %c0_i32 = arith.constant 0 : i32
    %c0_i32_0 = arith.constant 0 : i32
    %c0_i32_1 = arith.constant 0 : i32
    return %c0_i32, %c0_i32_0 : i32, i32
  }
  func.func @transform_8(%arg0: i32) -> (i32, i32) {
    %c0_i32 = arith.constant 0 : i32
    %c0_i32_0 = arith.constant 0 : i32
    %c0_i32_1 = arith.constant 0 : i32
    return %c0_i32, %c0_i32_0 : i32, i32
  }
  func.func @transform_9(%arg0: i32) -> (i32, i32) {
    %c0_i32 = arith.constant 0 : i32
    %c0_i32_0 = arith.constant 0 : i32
    return %c0_i32, %arg0 : i32, i32
  }
}

</mosaic_0001>

<bundles_post_ra>
// kernel: tpu_custom_call.1
= control target key start
LH: loop header
LB: loop body
LE: loop exit
PB: predicated region body
PF: predicated region fallthrough
CT: control target
= control target key end

     0   :  { %vm218_vm0 = vcmask 1042432   ;;  %v772_v3 = vmov 0   ;;  %vm163_vm1 = vcmask 220160   ;;  %s1115_s0 = inlined_call_operand.vmem [shape: f32[27,128], index: 0, kind: input, shape index: {}]   ;;  %s1116_s1 = inlined_call_operand.vmem [shape: f32[144,27], index: 1, kind: input, shape index: {}]   ;;  %s1117_s2 = inlined_call_operand.vmem [shape: f32[144,1], index: 2, kind: input, shape index: {}]   ;;  %s1118_s3 = inlined_call_operand.vmem [shape: f32[81,144], index: 3, kind: input, shape index: {}]   ;;  %s1119_s4 = inlined_call_operand.vmem [shape: f32[81,1], index: 4, kind: input, shape index: {}]   ;;  %s1120_s5 = inlined_call_operand.vmem [shape: f32[16,81], index: 5, kind: input, shape index: {}]   ;;  %s1121_s6 = inlined_call_operand.vmem [shape: f32[16,1], index: 6, kind: input, shape index: {}]   ;;  %s1122_s7 = inlined_call_operand.vmem [shape: f32[4,16], index: 7, kind: input, shape index: {}]   ;;  %s1123_s8 = inlined_call_operand.vmem [shape: f32[4,1], index: 8, kind: input, shape index: {}]   ;;  %s1124_s9 = inlined_call_operand.hbm [shape: f32[4,128], index: 9, kind: output, shape index: {}]  }
   0x1   :  { %v36_v0 = vld [vmem:[%s1115_s0 + $0x18] sm:$0x7]  ;;  %v68_v1 = vld [vmem:[%s1117_s2 + $0x68] sm:$0xff]  ;;  %682 = vset.pattern.permute.xlu1 %v772_v3  ;;  %v35_v4 = vld [vmem:[%s1115_s0 + $0x10] sm:$0xff]  ;;  %683 = vset.pattern.permute.xlu2 %v772_v3 }
   0x2   :  { %v66_v2 = vld [vmem:[%s1117_s2 + $0x58] sm:$0xff]  ;;  %641 = vmatpush.msk.msra.mxu0 %vm218_vm0, %v36_v0  ;;  %140 = vperm.xlu1 %682, %v68_v1   ;;  %v34_v6 = vld [vmem:[%s1115_s0 + $0x8] sm:$0xff]  ;;  %v33_v7 = vld [vmem:[%s1115_s0] sm:$0xff] }
   0x3   :  { %v70_v5 = vld [vmem:[%s1117_s2 + $0x78] sm:$0xff]  ;;  %130 = vperm.xlu2 %683, %v66_v2   ;;  %681 = vset.pattern.permute.xlu0 %v772_v3  ;;  %v37_v8 = vld [vmem:[%s1116_s1] sm:$0xff]  ;;  %v65_v10 = vld [vmem:[%s1117_s2 + $0x50] sm:$0xff] }
   0x4   :  { %235 = vmatpush.msra.mxu0 %v35_v4  ;;  %675 = vmatpush.msk.msra.mxu3 %vm218_vm0, %v36_v0  ;;  %v67_v9 = vld [vmem:[%s1117_s2 + $0x60] sm:$0xff] }
   0x5   :  { %150 = vperm.xlu0 %681, %v70_v5   ;;  %v49_v11 = vld [vmem:[%s1116_s1 + $0x60] sm:$0xff] }
   0x6   :  { %236 = vmatpush.msra.mxu0 %v34_v6  ;;  %676 = vmatpush.msra.mxu3 %v35_v4 }
   0x8   :  { %237 = vmatpush.msra.mxu0 %v33_v7  ;;  %677 = vmatpush.msra.mxu3 %v34_v6 }
   0x9   :  { %642 = vmatmul.msk.f32.vlgmr.msra.gmra.mxu0 %vm163_vm1, %v37_v8 }
   0xa   :  { %14 = vsyncpa [#allocation3], 0  ;;  %135 = vperm.xlu1 %682, %v67_v9   ;;  %v69_v12 = vld [vmem:[%s1117_s2 + $0x70] sm:$0xff]  ;;  %678 = vmatpush.msra.mxu3 %v33_v7  ;;  %v38_v13 = vld [vmem:[%s1116_s1 + $0x8] sm:$0xff]  ;;  %vm399_vm2 = vcmask 130048   ;;  %vm565_vm3 = vcmask 1040384  }
   0xb   :  { %125 = vperm.xlu2 %683, %v65_v10   ;;  %654 = vmatmul.msk.f32.vlgmr.msra.gmra.mxu3 %vm163_vm1, %v49_v11  ;;  %v63_v14 = vld [vmem:[%s1117_s2 + $0x40] sm:$0xff]  ;;  %v62_v15 = vld [vmem:[%s1117_s2 + $0x38] sm:$0xff]  ;;  %v50_v16 = vld [vmem:[%s1116_s1 + $0x68] sm:$0xff]  ;;  %vm558_vm4 = vcmask 662528   ;;  %s632_s24 = sshll.u32 %s1124_s9, 4  ;;  %s633_s24 = int_to_ptr.hbm [resolvable:$true] %s632_s24 }
   0xc   :  { %v64_v17 = vld [vmem:[%s1117_s2 + $0x48] sm:$0xff]  ;;  %v39_v18 = vld [vmem:[%s1116_s1 + $0x10] sm:$0xff]  ;;  %v59_v20 = vld [vmem:[%s1117_s2 + $0x20] sm:$0xff] }
   0xd   :  { %145 = vperm.xlu0 %681, %v69_v12   ;;  %v60_v19 = vld [vmem:[%s1117_s2 + $0x28] sm:$0xff]  ;;  %v51_v21 = vld [vmem:[%s1116_s1 + $0x70] sm:$0xff]  ;;  %v40_v23 = vld [vmem:[%s1116_s1 + $0x18] sm:$0xff] }
   0xe   :  { %v61_v22 = vld [vmem:[%s1117_s2 + $0x30] sm:$0xff]  ;;  %v72_v24 = vld [vmem:[%s1117_s2 + $0x88] sm:$0xff]  ;;  %v52_v26 = vld [vmem:[%s1116_s1 + $0x78] sm:$0xff] }
   0xf   :  { %v57_v25 = vld [vmem:[%s1117_s2 + $0x10] sm:$0xff]  ;;  %v58_v27 = vld [vmem:[%s1117_s2 + $0x18] sm:$0xff]  ;;  %v41_v28 = vld [vmem:[%s1116_s1 + $0x20] sm:$0xff] }
  0x10   :  { %v56_v29 = vld [vmem:[%s1117_s2 + $0x8] sm:$0xff]  ;;  %v55_v30 = vld [vmem:[%s1117_s2] sm:$0xff]  ;;  %v343_v36 = vld [vmem:[%s1119_s4 + $0x50] sm:$0x1] }
  0x11   :  { %643 = vmatmul.msk.f32.gmra.mxu0 %vm163_vm1, %v38_v13  ;;  %v53_v31 = vld [vmem:[%s1116_s1 + $0x80] sm:$0xff]  ;;  %v42_v33 = vld [vmem:[%s1116_s1 + $0x28] sm:$0xff]  ;;  %v43_v37 = vld [vmem:[%s1116_s1 + $0x30] sm:$0xff] }
  0x12   :  { %115 = vperm.xlu1 %682, %v63_v14   ;;  %v71_v32 = vld [vmem:[%s1117_s2 + $0x80] sm:$0xff]  ;;  %v342_v34 = vld [vmem:[%s1119_s4 + $0x48] sm:$0xff]  ;;  %v339_v38 = vld [vmem:[%s1119_s4 + $0x30] sm:$0xff] }
  0x13   :  { %110 = vperm.xlu2 %683, %v62_v15   ;;  %655 = vmatmul.msk.f32.gmra.mxu3 %vm163_vm1, %v50_v16  ;;  %v54_v35 = vld [vmem:[%s1116_s1 + $0x88] sm:$0xff]  ;;  %v341_v39 = vld [vmem:[%s1119_s4 + $0x40] sm:$0xff]  ;;  %v340_v40 = vld [vmem:[%s1119_s4 + $0x38] sm:$0xff] }
  0x14   :  { %v44_v41 = vld [vmem:[%s1116_s1 + $0x38] sm:$0xff]  ;;  %v338_v43 = vld [vmem:[%s1119_s4 + $0x28] sm:$0xff]  ;;  %v337_v44 = vld [vmem:[%s1119_s4 + $0x20] sm:$0xff] }
  0x15   :  { %120 = vperm.xlu0 %681, %v64_v17   ;;  %v336_v42 = vld [vmem:[%s1119_s4 + $0x18] sm:$0xff]  ;;  %v45_v45 = vld [vmem:[%s1116_s1 + $0x40] sm:$0xff]  ;;  %v335_v46 = vld [vmem:[%s1119_s4 + $0x10] sm:$0xff] }
  0x16   :  { %v333_v47 = vld [vmem:[%s1119_s4] sm:$0xff]  ;;  %v334_v48 = vld [vmem:[%s1119_s4 + $0x8] sm:$0xff]  ;;  %v47_v53 = vld [vmem:[%s1116_s1 + $0x50] sm:$0xff] }
  0x17   :  { %v46_v49 = vld [vmem:[%s1116_s1 + $0x48] sm:$0xff]  ;;  %v595_v51 = vld [vmem:[%s1123_s8] sm:$0xf]  ;;  %v48_v54 = vld [vmem:[%s1116_s1 + $0x58] sm:$0xff] }
  0x18   :  { %v547_v50 = vld [vmem:[%s1121_s6 + $0x8] sm:$0xff]  ;;  %v546_v52 = vld [vmem:[%s1121_s6] sm:$0xff] }
  0x19   :  { %644 = vmatmul.msk.f32.gmra.mxu0 %vm163_vm1, %v39_v18 }
  0x1a   :  { %100 = vperm.xlu1 %682, %v60_v19  }
  0x1b   :  { %95 = vperm.xlu2 %683, %v59_v20   ;;  %656 = vmatmul.msk.f32.gmra.mxu3 %vm163_vm1, %v51_v21 }
  0x1d   :  { %105 = vperm.xlu0 %681, %v61_v22  }
  0x21   :  { %645 = vmatmul.msk.f32.gmra.mxu0 %vm163_vm1, %v40_v23 }
  0x22   :  { %160 = vperm.xlu1 %682, %v72_v24  }
  0x23   :  { %85 = vperm.xlu2 %683, %v57_v25   ;;  %657 = vmatmul.msk.f32.gmra.mxu3 %vm163_vm1, %v52_v26 }
  0x25   :  { %90 = vperm.xlu0 %681, %v58_v27  }
  0x29   :  { %646 = vmatmul.msk.f32.gmra.mxu0 %vm163_vm1, %v41_v28 }
  0x2a   :  { %80 = vperm.xlu1 %682, %v56_v29  }
  0x2b   :  { %75 = vperm.xlu2 %683, %v55_v30   ;;  %658 = vmatmul.msk.f32.gmra.mxu3 %vm163_vm1, %v53_v31 }
  0x2d   :  { %155 = vperm.xlu0 %681, %v71_v32  }
  0x31   :  { %647 = vmatmul.msk.f32.gmra.mxu0 %vm163_vm1, %v42_v33 }
  0x32   :  { %391 = vperm.xlu1 %682, %v342_v34   ;;  %v312_v34 = vld [vmem:[%s1118_s3 + $0x8] sm:$0xff] }
  0x33   :  { %659 = vmatmul.msk.f32.gmra.mxu3 %vm163_vm1, %v54_v35  ;;  %386 = vperm.xlu2 %683, %v341_v39   ;;  %v314_v39 = vld [vmem:[%s1118_s3 + $0x18] sm:$0xff] }
  0x35   :  { %396 = vperm.xlu0 %681, %v343_v36  }
  0x39   :  { %648 = vmatmul.msk.f32.gmra.mxu0 %vm163_vm1, %v43_v37 }
  0x3a   :  { %376 = vperm.xlu1 %682, %v339_v38  }
  0x3b   :  { %371 = vperm.xlu2 %683, %v338_v43  }
  0x3d   :  { %381 = vperm.xlu0 %681, %v340_v40  }
  0x41   :  { %649 = vmatmul.msk.f32.gmra.mxu0 %vm163_vm1, %v44_v41 }
  0x42   :  { %361 = vperm.xlu1 %682, %v336_v42  }
  0x43   :  { %356 = vperm.xlu2 %683, %v335_v46   ;;  %v316_v46 = vld [vmem:[%s1118_s3 + $0x28] sm:$0xff] }
  0x45   :  { %366 = vperm.xlu0 %681, %v337_v44  }
  0x49   :  { %650 = vmatmul.msk.f32.gmra.mxu0 %vm163_vm1, %v45_v45 }
  0x4a   :  { %346 = vperm.xlu1 %682, %v333_v47  }
  0x4b   :  { %555 = vperm.xlu2 %683, %v547_v50  }
  0x4d   :  { %351 = vperm.xlu0 %681, %v334_v48  }
  0x51   :  { %651 = vmatmul.msk.f32.gmra.mxu0 %vm163_vm1, %v46_v49 }
  0x52   :  { %598 = vperm.xlu1 %682, %v595_v51  }
  0x55   :  { %550 = vperm.xlu0 %681, %v546_v52  }
  0x59   :  { %652 = vmatmul.msk.f32.gmra.mxu0 %vm163_vm1, %v47_v53 }
  0x5d   :  { %v131_v25 = vpop.permute.xlu2 %130 }
  0x61   :  { %653 = vmatmul.msk.f32.gmra.mxu0 %vm163_vm1, %v48_v54 }
  0x65   :  { %v126_v30 = vpop.permute.xlu2 %125 }
  0x6d   :  { %v111_v32 = vpop.permute.xlu2 %110 }
  0x74   :  { %v141_v59 = vpop.permute.xlu1 %140 }
  0x75   :  { %v96_v35 = vpop.permute.xlu2 %95 }
  0x77   :  { %v151_v55 = vpop.permute.xlu0 %150 }
  0x7c   :  { %v136_v0 = vpop.permute.xlu1 %135 }
  0x7d   :  { %v86_v43 = vpop.permute.xlu2 %85 }
  0x7f   :  { %v146_v57 = vpop.permute.xlu0 %145 }
  0x84   :  { %v116_v4 = vpop.permute.xlu1 %115 }
  0x86   :  { %v1004_v56 = vpop.f32.mrf.mxu0 }
  0x87   :  { %v121_v61 = vpop.permute.xlu0 %120 }
  0x8c   :  { %v101_v12 = vpop.permute.xlu1 %100 }
  0x8e   :  { %v1006_v58 = vpop.f32.mrf.mxu0  ;;  %v275_v60 = vpop.f32.mrf.mxu3 }
  0x8f   :  { %v106_v3 = vpop.permute.xlu0 %105  ;;  %v276_v11 = vadd.f32 %v275_v60, %v136_v0 }
  0x94   :  { %v161_v22 = vpop.permute.xlu1 %160 }
  0x96   :  { %v1008_v62 = vpop.f32.mrf.mxu0  ;;  %v278_v63 = vpop.f32.mrf.mxu3 }
  0x97   :  { %v279_v8 = vadd.f32 %v278_v63, %v141_v59  ;;  %v1014_v10 = vpop.permute.xlu0 %90  ;;  %v318_v59 = vld [vmem:[%s1118_s3 + $0x38] sm:$0xff] }
  0x9c   :  { %v81_v53 = vpop.permute.xlu1 %80 }
  0x9e   :  { %v1010_v1 = vpop.f32.mrf.mxu0  ;;  %v281_v2 = vpop.f32.mrf.mxu3 }
  0x9f   :  { %v282_v5 = vadd.f32 %v281_v2, %v146_v57  ;;  %v156_v19 = vpop.permute.xlu0 %155  ;;  %v249_v52 = vadd.f32 %v1010_v1, %v1014_v10  ;;  %v76_v57 = vpop.permute.xlu2 %75  ;;  %v320_v2 = vld [vmem:[%s1118_s3 + $0x48] sm:$0xff]  ;;  %v317_v10 = vld [vmem:[%s1118_s3 + $0x30] sm:$0xff] }
  0xa0   :  { %v240_v0 = vadd.f32 %v1004_v56, %v76_v57  ;;  %v311_v56 = vld [vmem:[%s1118_s3] sm:$0xff] }
  0xa1   :  { %684 = vtanh.f32 %v282_v5  ;;  %v322_v5 = vld [vmem:[%s1118_s3 + $0x58] sm:$0xff] }
  0xa6   :  { %v1012_v6 = vpop.f32.mrf.mxu0  ;;  %v284_v7 = vpop.f32.mrf.mxu3 }
  0xa7   :  { %v285_v9 = vadd.f32 %v284_v7, %v151_v55  ;;  %v685_v14 = vpop.eup %684  ;;  %v252_v50 = vadd.f32 %v1012_v6, %v96_v35  ;;  %v246_v55 = vadd.f32 %v1008_v62, %v86_v43  ;;  %v313_v6 = vld [vmem:[%s1118_s3 + $0x10] sm:$0xff]  ;;  %v324_v7 = vld [vmem:[%s1118_s3 + $0x68] sm:$0xff] }
  0xa9   :  { %686 = vtanh.f32 %v285_v9  ;;  %v326_v9 = vld [vmem:[%s1118_s3 + $0x78] sm:$0xff] }
  0xaa   :  { %688 = vtanh.f32 %v279_v8  ;;  %v315_v8 = vld [vmem:[%s1118_s3 + $0x20] sm:$0xff] }
  0xab   :  { %690 = vtanh.f32 %v276_v11  ;;  %v328_v11 = vld [vmem:[%s1118_s3 + $0x88] sm:$0xff] }
  0xae   :  { %v254_v13 = vpop.f32.mrf.mxu0  ;;  %v287_v15 = vpop.f32.mrf.mxu3 }
  0xaf   :  { %v687_v16 = vpop.eup %686  ;;  %v288_v20 = vadd.f32 %v287_v15, %v156_v19  ;;  %v255_v48 = vadd.f32 %v254_v13, %v101_v12  ;;  %v319_v12 = vld [vmem:[%s1118_s3 + $0x40] sm:$0xff]  ;;  %v330_v13 = vld [vmem:[%s1118_s3 + $0x98] sm:$0xff]  ;;  %v332_v15 = vld [vmem:[%s1118_s3 + $0xa8] sm:$0x1] }
  0xb0   :  { %433 = vmatpush.msra.mxu1 %v687_v16  ;;  %v689_v17 = vpop.eup %688  ;;  %v323_v16 = vld [vmem:[%s1118_s3 + $0x60] sm:$0xff]  ;;  %v329_v19 = vld [vmem:[%s1118_s3 + $0x90] sm:$0xff] }
  0xb1   :  { %v691_v18 = vpop.eup %690  ;;  %692 = vtanh.f32 %v288_v20  ;;  %v331_v20 = vld [vmem:[%s1118_s3 + $0xa0] sm:$0x1] }
  0xb2   :  { %434 = vmatpush.msra.mxu1 %v685_v14  ;;  %v321_v14 = vld [vmem:[%s1118_s3 + $0x50] sm:$0xff] }
  0xb4   :  { %435 = vmatpush.msra.mxu1 %v689_v17  ;;  %v325_v17 = vld [vmem:[%s1118_s3 + $0x70] sm:$0xff] }
  0xb6   :  { %v257_v21 = vpop.f32.mrf.mxu0  ;;  %v290_v23 = vpop.f32.mrf.mxu3  ;;  %436 = vmatpush.msra.mxu1 %v691_v18  ;;  %v327_v18 = vld [vmem:[%s1118_s3 + $0x80] sm:$0xff] }
  0xb7   :  { %v291_v24 = vadd.f32 %v290_v23, %v161_v22  ;;  %v693_v27 = vpop.eup %692  ;;  %v258_v45 = vadd.f32 %v257_v21, %v106_v3  ;;  %v392_v21 = vpop.permute.xlu1 %391 }
  0xb8   :  { %v397_v22 = vpop.permute.xlu0 %396 }
  0xb9   :  { %694 = vtanh.f32 %v291_v24 }
  0xbe   :  { %v260_v26 = vpop.f32.mrf.mxu0 }
  0xbf   :  { %v695_v28 = vpop.eup %694  ;;  %v261_v42 = vadd.f32 %v260_v26, %v111_v32  ;;  %v377_v23 = vpop.permute.xlu1 %376 }
  0xc0   :  { %497 = vmatpush.msra.mxu2 %v695_v28  ;;  %v387_v28 = vpop.permute.xlu2 %386 }
  0xc2   :  { %498 = vmatpush.msra.mxu2 %v693_v27 }
  0xc3   :  { %660 = vmatmul.msk.f32.vlgmr.msra.gmra.mxu2 %vm399_vm2, %v312_v34 }
  0xc6   :  { %v263_v29 = vpop.f32.mrf.mxu0 }
  0xc7   :  { %v264_v41 = vadd.f32 %v263_v29, %v116_v4  ;;  %v362_v26 = vpop.permute.xlu1 %361 }
  0xc8   :  { %v372_v35 = vpop.permute.xlu2 %371 }
  0xcb   :  { %661 = vmatmul.msk.f32.gmra.mxu2 %vm399_vm2, %v314_v39 }
  0xce   :  { %v266_v31 = vpop.f32.mrf.mxu0 }
  0xcf   :  { %v267_v40 = vadd.f32 %v266_v31, %v121_v61  ;;  %v243_v61 = vadd.f32 %v1006_v58, %v81_v53 }
  0xd3   :  { %662 = vmatmul.msk.f32.gmra.mxu2 %vm399_vm2, %v316_v46 }
  0xd6   :  { %v269_v33 = vpop.f32.mrf.mxu0 }
  0xd7   :  { %v270_v37 = vadd.f32 %v269_v33, %v126_v30  ;;  %v347_v30 = vpop.permute.xlu1 %346 }
  0xdb   :  { %663 = vmatmul.msk.f32.gmra.mxu2 %vm399_vm2, %v318_v59 }
  0xde   :  { %v272_v36 = vpop.f32.mrf.mxu0 }
  0xdf   :  { %v273_v38 = vadd.f32 %v272_v36, %v131_v25  ;;  %v382_v25 = vpop.permute.xlu0 %381 }
  0xe1   :  { %696 = vtanh.f32 %v273_v38 }
  0xe2   :  { %698 = vtanh.f32 %v270_v37 }
  0xe3   :  { %700 = vtanh.f32 %v267_v40  ;;  %664 = vmatmul.msk.f32.gmra.mxu2 %vm399_vm2, %v320_v2 }
  0xe4   :  { %702 = vtanh.f32 %v264_v41  ;;  %v357_v41 = vpop.permute.xlu2 %356 }
  0xe5   :  { %704 = vtanh.f32 %v261_v42 }
  0xe6   :  { %706 = vtanh.f32 %v258_v45 }
  0xe7   :  { %v697_v44 = vpop.eup %696  ;;  %708 = vtanh.f32 %v255_v48  ;;  %v367_v29 = vpop.permute.xlu0 %366 }
  0xe8   :  { %437 = vmatpush.msra.mxu1 %v697_v44  ;;  %v699_v47 = vpop.eup %698  ;;  %710 = vtanh.f32 %v252_v50 }
  0xe9   :  { %v701_v49 = vpop.eup %700  ;;  %712 = vtanh.f32 %v249_v52 }
  0xea   :  { %438 = vmatpush.msra.mxu1 %v699_v47  ;;  %v703_v51 = vpop.eup %702  ;;  %714 = vtanh.f32 %v246_v55 }
  0xeb   :  { %v705_v54 = vpop.eup %704  ;;  %716 = vtanh.f32 %v243_v61  ;;  %665 = vmatmul.msk.f32.gmra.mxu2 %vm399_vm2, %v322_v5 }
  0xec   :  { %439 = vmatpush.msra.mxu1 %v701_v49  ;;  %v707_v60 = vpop.eup %706  ;;  %718 = vtanh.f32 %v240_v0 }
  0xed   :  { %v709_v63 = vpop.eup %708 }
  0xee   :  { %440 = vmatpush.msra.mxu1 %v703_v51  ;;  %v711_v62 = vpop.eup %710 }
  0xef   :  { %v713_v1 = vpop.eup %712  ;;  %v352_v36 = vpop.permute.xlu0 %351 }
  0xf0   :  { %441 = vmatpush.msra.mxu1 %v705_v54  ;;  %v715_v58 = vpop.eup %714 }
  0xf1   :  { %v717_v3 = vpop.eup %716 }
  0xf2   :  { %442 = vmatpush.msra.mxu1 %v707_v60  ;;  %v719_v4 = vpop.eup %718 }
  0xf3   :  { %666 = vmatmul.msk.f32.gmra.mxu2 %vm399_vm2, %v324_v7 }
  0xf4   :  { %443 = vmatpush.msra.mxu1 %v709_v63 }
  0xf6   :  { %444 = vmatpush.msra.mxu1 %v711_v62 }
  0xf8   :  { %445 = vmatpush.msra.mxu1 %v713_v1 }
  0xfa   :  { %446 = vmatpush.msra.mxu1 %v715_v58 }
  0xfb   :  { %667 = vmatmul.msk.f32.gmra.mxu2 %vm399_vm2, %v326_v9 }
  0xfc   :  { %447 = vmatpush.msra.mxu1 %v717_v3 }
  0xfe   :  { %448 = vmatpush.msra.mxu1 %v719_v4 }
  0xff   :  { %449 = vmatmul.f32.vlgmr.msra.gmra.mxu1 %v311_v56 }
 0x103   :  { %668 = vmatmul.msk.f32.gmra.mxu2 %vm399_vm2, %v328_v11 }
 0x107   :  { %452 = vmatmul.f32.gmra.mxu1 %v313_v6 }
 0x10b   :  { %669 = vmatmul.msk.f32.gmra.mxu2 %vm399_vm2, %v330_v13 }
 0x10f   :  { %455 = vmatmul.f32.gmra.mxu1 %v315_v8 }
 0x113   :  { %670 = vmatmul.msk.f32.gmra.mxu2 %vm399_vm2, %v332_v15 }
 0x117   :  { %458 = vmatmul.f32.gmra.mxu1 %v317_v10 }
 0x11f   :  { %461 = vmatmul.f32.gmra.mxu1 %v319_v12 }
 0x127   :  { %464 = vmatmul.f32.gmra.mxu1 %v321_v14 }
 0x12f   :  { %467 = vmatmul.f32.gmra.mxu1 %v323_v16 }
 0x137   :  { %470 = vmatmul.f32.gmra.mxu1 %v325_v17 }
 0x13f   :  { %473 = vmatmul.f32.gmra.mxu1 %v327_v18 }
 0x146   :  { %v500_v24 = vpop.f32.mrf.mxu2 }
 0x147   :  { %476 = vmatmul.f32.gmra.mxu1 %v329_v19 }
 0x14e   :  { %v503_v27 = vpop.f32.mrf.mxu2 }
 0x14f   :  { %479 = vmatmul.f32.gmra.mxu1 %v331_v20 }
 0x156   :  { %v506_v32 = vpop.f32.mrf.mxu2 }
 0x15e   :  { %v509_v39 = vpop.f32.mrf.mxu2 }
 0x166   :  { %v512_v45 = vpop.f32.mrf.mxu2 }
 0x16e   :  { %v515_v49 = vpop.f32.mrf.mxu2 }
 0x176   :  { %v518_v52 = vpop.f32.mrf.mxu2 }
 0x17c   :  { %v450_v31 = vpop.f32.mrf.mxu1 }
 0x17d   :  { %v451_v33 = vadd.f32 %v450_v31, %v347_v30 }
 0x17e   :  { %v521_v54 = vpop.f32.mrf.mxu2 }
 0x17f   :  { %v1099_v34 = vadd.f32 %v500_v24, %v451_v33  ;;  %v545_v24 = vld [vmem:[%s1120_s5 + $0x8] sm:$0xff] }
 0x184   :  { %v453_v37 = vpop.f32.mrf.mxu1 }
 0x185   :  { %v454_v38 = vadd.f32 %v453_v37, %v352_v36 }
 0x186   :  { %v524_v57 = vpop.f32.mrf.mxu2 }
 0x187   :  { %v504_v40 = vadd.f32 %v503_v27, %v454_v38  ;;  %v551_v27 = vpop.permute.xlu0 %550 }
 0x18c   :  { %v456_v42 = vpop.f32.mrf.mxu1 }
 0x18d   :  { %v457_v43 = vadd.f32 %v456_v42, %v357_v41 }
 0x18e   :  { %v527_v60 = vpop.f32.mrf.mxu2 }
 0x18f   :  { %v507_v44 = vadd.f32 %v506_v32, %v457_v43  ;;  %v594_v32 = vld [vmem:[%s1122_s7] sm:$0xf] }
 0x194   :  { %v459_v46 = vpop.f32.mrf.mxu1 }
 0x195   :  { %v460_v47 = vadd.f32 %v459_v46, %v362_v26  ;;  %v556_v26 = vpop.permute.xlu2 %555 }
 0x196   :  { %v530_v62 = vpop.f32.mrf.mxu2 }
 0x197   :  { %v510_v48 = vadd.f32 %v509_v39, %v460_v47 }
 0x19c   :  { %v462_v50 = vpop.f32.mrf.mxu1 }
 0x19d   :  { %v463_v8 = vadd.f32 %v462_v50, %v367_v29 }
 0x19f   :  { %v513_v13 = vadd.f32 %v512_v45, %v463_v8 }
 0x1a4   :  { %v465_v51 = vpop.f32.mrf.mxu1 }
 0x1a5   :  { %v466_v6 = vadd.f32 %v465_v51, %v372_v35 }
 0x1a7   :  { %v516_v11 = vadd.f32 %v515_v49, %v466_v6 }
 0x1ac   :  { %v468_v53 = vpop.f32.mrf.mxu1 }
 0x1ad   :  { %v469_v4 = vadd.f32 %v468_v53, %v377_v23 }
 0x1af   :  { %v519_v9 = vadd.f32 %v518_v52, %v469_v4 }
 0x1b4   :  { %v471_v55 = vpop.f32.mrf.mxu1 }
 0x1b5   :  { %v472_v58 = vadd.f32 %v471_v55, %v382_v25 }
 0x1b7   :  { %v522_v7 = vadd.f32 %v521_v54, %v472_v58 }
 0x1bc   :  { %v474_v59 = vpop.f32.mrf.mxu1 }
 0x1bd   :  { %v475_v1 = vadd.f32 %v474_v59, %v387_v28 }
 0x1bf   :  { %v525_v5 = vadd.f32 %v524_v57, %v475_v1 }
 0x1c4   :  { %v477_v61 = vpop.f32.mrf.mxu1 }
 0x1c5   :  { %v478_v63 = vadd.f32 %v477_v61, %v392_v21 }
 0x1c7   :  { %v528_v3 = vadd.f32 %v527_v60, %v478_v63 }
 0x1cc   :  { %v480_v0 = vpop.f32.mrf.mxu1 }
 0x1cd   :  { %v481_v2 = vadd.f32 %v480_v0, %v397_v22  ;;  %v544_v22 = vld [vmem:[%s1120_s5] sm:$0xff]  ;;  %s773_s5 = smov [#allocation2]  }
 0x1ce   :  { %s630_s22 = sshll.u32 %s773_s5, 4  ;;  %s631_s22 = int_to_ptr.vmem [resolvable:$true] %s630_s22 }
 0x1cf   :  { %v531_v56 = vadd.f32 %v530_v62, %v481_v2 }
 0x1d1   :  { %720 = vtanh.f32 %v531_v56 }
 0x1d2   :  { %722 = vtanh.f32 %v528_v3 }
 0x1d3   :  { %724 = vtanh.f32 %v525_v5 }
 0x1d4   :  { %726 = vtanh.f32 %v522_v7 }
 0x1d5   :  { %728 = vtanh.f32 %v519_v9 }
 0x1d6   :  { %730 = vtanh.f32 %v516_v11 }
 0x1d7   :  { %v721_v10 = vpop.eup %720  ;;  %732 = vtanh.f32 %v513_v13 }
 0x1d8   :  { %671 = vmatpush.msk.msrb.mxu3 %vm565_vm3, %v721_v10  ;;  %v723_v12 = vpop.eup %722  ;;  %734 = vtanh.f32 %v510_v48 }
 0x1d9   :  { %v725_v14 = vpop.eup %724  ;;  %736 = vtanh.f32 %v507_v44 }
 0x1da   :  { %575 = vmatpush.msrb.mxu3 %v723_v12  ;;  %v727_v15 = vpop.eup %726  ;;  %738 = vtanh.f32 %v504_v40 }
 0x1db   :  { %v729_v16 = vpop.eup %728  ;;  %740 = vtanh.f32 %v1099_v34  ;;  %v599_v34 = vpop.permute.xlu1 %598 }
 0x1dc   :  { %576 = vmatpush.msrb.mxu3 %v725_v14  ;;  %v731_v17 = vpop.eup %730 }
 0x1dd   :  { %v733_v18 = vpop.eup %732 }
 0x1de   :  { %577 = vmatpush.msrb.mxu3 %v727_v15  ;;  %v735_v19 = vpop.eup %734 }
 0x1df   :  { %v737_v20 = vpop.eup %736 }
 0x1e0   :  { %578 = vmatpush.msrb.mxu3 %v729_v16  ;;  %v739_v21 = vpop.eup %738 }
 0x1e1   :  { %v741_v23 = vpop.eup %740 }
 0x1e2   :  { %579 = vmatpush.msrb.mxu3 %v731_v17 }
 0x1e4   :  { %580 = vmatpush.msrb.mxu3 %v733_v18 }
 0x1e6   :  { %581 = vmatpush.msrb.mxu3 %v735_v19 }
 0x1e8   :  { %582 = vmatpush.msrb.mxu3 %v737_v20 }
 0x1ea   :  { %583 = vmatpush.msrb.mxu3 %v739_v21 }
 0x1ec   :  { %584 = vmatpush.msrb.mxu3 %v741_v23 }
 0x1ed   :  { %672 = vmatmul.msk.f32.vlgmr.msrb.gmra.mxu3 %vm558_vm4, %v544_v22 }
 0x1f5   :  { %673 = vmatmul.msk.f32.gmra.mxu3 %vm558_vm4, %v545_v24 }
 0x270   :  { %v586_v25 = vpop.f32.mrf.mxu3 }
 0x271   :  { %v587_v29 = vadd.f32 %v586_v25, %v551_v27 }
 0x278   :  { %v589_v28 = vpop.f32.mrf.mxu3 }
 0x279   :  { %v590_v30 = vadd.f32 %v589_v28, %v556_v26 }
 0x27b   :  { %742 = vtanh.f32 %v590_v30 }
 0x27c   :  { %744 = vtanh.f32 %v587_v29 }
 0x281   :  { %v743_v31 = vpop.eup %742 }
 0x282   :  { %618 = vmatpush.msra.mxu3 %v743_v31  ;;  %v745_v33 = vpop.eup %744 }
 0x284   :  { %619 = vmatpush.msra.mxu3 %v745_v33 }
 0x285   :  { %674 = vmatmul.msk.f32.vlgmr.msra.gmra.mxu3 %vm399_vm2, %v594_v32 }
 0x308   :  { %v621_v35 = vpop.f32.mrf.mxu3 }
 0x309   :  { %v622_v36 = vadd.f32 %v621_v35, %v599_v34 }
 0x30b   :  { %624 = vst [vmem:[#allocation2] sm:$0xf] %v622_v36 }
 0x30c   :  { %635 = dma.vmem_to_hbm [thread:$0]  %s631_s22, 64, %s633_s24, [#allocation3]  }
 0x30d   :  { %770 = dma.done.wait [#allocation3], 64  }
 0x30e   :  { %771 = vsyncadd [#allocation3], 4294967232 }
 0x30f   :  { %640 = vsyncpa [#allocation3], 1 }

</bundles_post_ra>
